<compile_context>
chip_gen: v5e
topology: v5e:2x2
jax: 0.10.0
libtpu: 0.0.40
codegen_flags: <defaults>
</compile_context>

<pallas_src>
import jax
import jax.numpy as jnp
from jax.experimental import pallas as pl
from jax.experimental.pallas import tpu as pltpu


def linear_embed_kernel(p_ref, mul_ref, add_ref, wenc_ref, wdec_ref, bdec_ref,
                        out_ref):
    """One grid step == one tile of TM flattened patch rows.

    p_ref    : (TM, C*p*p)  bf16   flattened patches (rows span samples)
    mul_ref  : (TM, D)      f32    per-row FiLM multiplier (1 + scale)
    add_ref  : (TM, D)      f32    per-row FiLM shift (benc folded in)
    wenc_ref : (C*p*p, D)   bf16   encoder (Conv2d-as-matmul) weight
    wdec_ref : (D, O_pad)   bf16   decoder weight, zero-padded to 128 lanes
    bdec_ref : (1, O_pad)   f32    decoder bias, zero-padded
    out_ref  : (TM, O_pad)  f32
    """
    # encoder: patch-conv as matmul, bf16 inputs -> f32 accumulation on MXU
    x = jnp.dot(p_ref[...], wenc_ref[...],
                preferred_element_type=jnp.float32)            # (TM, D) f32
    # norm_layer == Identity; FiLM modulation (bias folded into add) in f32
    x = x * mul_ref[...] + add_ref[...]
    # decoder: Linear(D, O_pad), bf16 inputs -> f32 accumulation
    y = jnp.dot(x.astype(jnp.bfloat16), wdec_ref[...],
                preferred_element_type=jnp.float32)            # (TM, O_pad)
    out_ref[...] = y + bdec_ref[...]                           # lane-dense store


def linear_embed_forward(x, emb, params, patch_size, out_channels):
    N, C, H, W = x.shape
    p = patch_size
    gh, gw = H // p, W // p
    L = gh * gw
    CP2 = C * p * p
    D = params["wenc"].shape[1]
    O = out_channels * p * p
    O_pad = ((O + 127) // 128) * 128          # lane-dense decoder width
    M = N * L

    # --- glue: patchify NCHW -> (M, C*p*p) directly in bf16 (fused by XLA) ---
    patches = (x.reshape(N, C, gh, p, gw, p)
                .transpose(0, 2, 4, 1, 3, 5)
                .reshape(M, CP2)).astype(jnp.bfloat16)

    # --- FiLM scale/shift for the whole batch: one tiny matmul in plain JAX ---
    e = emb.astype(jnp.float32)
    silu = e * jax.nn.sigmoid(e)
    eo = silu @ params["wemb"] + params["bemb"][0]              # (N, 2D)
    scale, shift = eo[:, :D], eo[:, D:]
    mul = 1.0 + scale                                           # (N, D)
    add = params["benc"][0] * mul + shift                       # fold conv bias
    mul_rows = jnp.broadcast_to(mul[:, None, :], (N, L, D)).reshape(M, D)
    add_rows = jnp.broadcast_to(add[:, None, :], (N, L, D)).reshape(M, D)

    # --- weights: bf16 matmul operands; decoder padded to O_pad lanes ---
    wenc = params["wenc"].astype(jnp.bfloat16)
    wdec = jnp.zeros((D, O_pad), jnp.float32).at[:, :O].set(params["wdec"]
                                                            ).astype(jnp.bfloat16)
    bdec = jnp.zeros((1, O_pad), jnp.float32).at[:, :O].set(params["bdec"])

    # --- row tiling: largest tile <= 512, rows padded to a tile multiple ---
    TM = min(512, ((M + 7) // 8) * 8)
    M_pad = ((M + TM - 1) // TM) * TM
    if M_pad != M:
        pad = ((0, M_pad - M), (0, 0))
        patches = jnp.pad(patches, pad)
        mul_rows = jnp.pad(mul_rows, pad)
        add_rows = jnp.pad(add_rows, pad)

    out = pl.pallas_call(
        linear_embed_kernel,
        out_shape=jax.ShapeDtypeStruct((M_pad, O_pad), jnp.float32),
        grid=(M_pad // TM,),
        in_specs=[
            pl.BlockSpec((TM, CP2), lambda i: (i, 0)),
            pl.BlockSpec((TM, D), lambda i: (i, 0)),
            pl.BlockSpec((TM, D), lambda i: (i, 0)),
            pl.BlockSpec((CP2, D), lambda i: (0, 0)),      # weights stay resident
            pl.BlockSpec((D, O_pad), lambda i: (0, 0)),
            pl.BlockSpec((1, O_pad), lambda i: (0, 0)),
        ],
        out_specs=pl.BlockSpec((TM, O_pad), lambda i: (i, 0)),
        compiler_params=pltpu.CompilerParams(
            dimension_semantics=("parallel",),              # shards across v7x TCs
            vmem_limit_bytes=32 * 1024 * 1024),             # safe under v7x 64 MiB
    )(patches, mul_rows, add_rows, wenc, wdec, bdec)

    # --- glue: slice padding, unpatchify (M, O) -> NCHW ---
    # TODO(synk): for large production shapes, fold the unpatchify layout into
    # the out_spec/index_map to avoid a second full-tensor pass in XLA.
    dec = out[:M, :O].reshape(N, gh, gw, p, p, out_channels)
    imgs = jnp.einsum("nhwpqc->nchpwq", dec)
    return imgs.reshape(N, out_channels, gh * p, gw * p)


def reference_forward(x, emb, params, patch_size, out_channels):
    """Pure-JAX f32 reference reproducing the PyTorch module semantics."""
    N, C, H, W = x.shape
    p = patch_size
    gh, gw = H // p, W // p
    D = params["wenc"].shape[1]
    patches = (x.reshape(N, C, gh, p, gw, p)
                .transpose(0, 2, 4, 1, 3, 5)
                .reshape(N, gh * gw, C * p * p))
    enc = patches @ params["wenc"] + params["benc"][0]           # conv-as-matmul
    silu = emb * jax.nn.sigmoid(emb)
    eo = silu @ params["wemb"] + params["bemb"][0]
    scale, shift = eo[:, None, :D], eo[:, None, D:]
    h = enc * (1.0 + scale) + shift                              # Identity norm + FiLM
    dec = h @ params["wdec"] + params["bdec"][0]
    imgs = dec.reshape(N, gh, gw, p, p, out_channels)
    imgs = jnp.einsum("nhwpqc->nchpwq", imgs)
    return imgs.reshape(N, out_channels, gh * p, gw * p)


def init_params(key, in_channels, patch_size, embed_dim, out_channels):
    """Deterministic synthetic params with the same shapes as the PyTorch module."""
    p = patch_size
    CP2 = in_channels * p * p
    O = out_channels * p * p
    k = jax.random.split(key, 6)
    # encoder: Conv2d(in, D, k=p, s=p) weight (D, C, p, p) -> matmul form (C*p*p, D)
    wenc = (jax.random.normal(k[0], (embed_dim, in_channels, p, p), jnp.float32) * 0.02
            ).reshape(embed_dim, CP2).T
    benc = jax.random.normal(k[1], (1, embed_dim), jnp.float32) * 0.02
    # emb_layers Linear(D, 2D): weight (2D, D) -> (D, 2D)
    wemb = (jax.random.normal(k[2], (2 * embed_dim, embed_dim), jnp.float32) * 0.02).T
    bemb = jax.random.normal(k[3], (1, 2 * embed_dim), jnp.float32) * 0.02
    # decoder Linear(D, out*p*p): weight (O, D) -> (D, O)
    wdec = (jax.random.normal(k[4], (O, embed_dim), jnp.float32) * 0.02).T
    bdec = jax.random.normal(k[5], (1, O), jnp.float32) * 0.02
    return {"wenc": jnp.asarray(wenc), "benc": benc,
            "wemb": jnp.asarray(wemb), "bemb": bemb,
            "wdec": jnp.asarray(wdec), "bdec": bdec}


if __name__ == "__main__":
    # Small module config: image=16, patch=4, in_ch=4, out_ch=3, embed_dim=32
    image_size, patch_size = 16, 4
    in_channels, out_channels, embed_dim = 4, 3, 32
    batch = 2

    key = jax.random.PRNGKey(0)
    kx, ke, kp = jax.random.split(key, 3)
    x = jax.random.normal(kx, (batch, in_channels, image_size, image_size), jnp.float32)
    emb = jax.random.normal(ke, (batch, embed_dim), jnp.float32)
    params = init_params(kp, in_channels, patch_size, embed_dim, out_channels)

    out = linear_embed_forward(x, emb, params, patch_size, out_channels)
    out = jax.block_until_ready(out)

    ref = reference_forward(x, emb, params, patch_size, out_channels)
    assert out.shape == (batch, out_channels, image_size, image_size)
    # Tolerance loosened vs. pure-f32 because matmul inputs are bf16 (f32 accumulate).
    assert jnp.allclose(out, ref, atol=1e-2, rtol=1e-2)

    print("KERNEL_OK")
</pallas_src>

<mosaic_0001>
module attributes {stable_mosaic.version = 11 : i64} {
  func.func @linear_embed_kernel(%arg0: i32, %arg1: memref<32x64xbf16, #tpu.memory_space<vmem>>, %arg2: memref<32x32xf32, #tpu.memory_space<vmem>>, %arg3: memref<32x32xf32, #tpu.memory_space<vmem>>, %arg4: memref<64x32xbf16, #tpu.memory_space<vmem>>, %arg5: memref<32x128xbf16, #tpu.memory_space<vmem>>, %arg6: memref<1x128xf32, #tpu.memory_space<vmem>>, %arg7: memref<32x128xf32, #tpu.memory_space<vmem>>) attributes {dimension_semantics = [#tpu.dimension_semantics<parallel>], iteration_bounds = array<i64: 1>, scalar_prefetch = 0 : i64, scratch_operands = 0 : i64, tpu.core_type = #tpu.core_type<tc>, window_params = [{transform_indices = @transform_0, window_bounds = array<i64: 32, 64>}, {transform_indices = @transform_1, window_bounds = array<i64: 32, 32>}, {transform_indices = @transform_2, window_bounds = array<i64: 32, 32>}, {pipeline_mode = #tpu.pipeline_mode<synchronous>, transform_indices = @transform_3, window_bounds = array<i64: 64, 32>}, {pipeline_mode = #tpu.pipeline_mode<synchronous>, transform_indices = @transform_4, window_bounds = array<i64: 32, 128>}, {pipeline_mode = #tpu.pipeline_mode<synchronous>, transform_indices = @transform_5, window_bounds = array<i64: 1, 128>}, {transform_indices = @transform_6, window_bounds = array<i64: 32, 128>}]} {
    %c0 = arith.constant 0 : index
    %c0_0 = arith.constant 0 : index
    %0 = vector.load %arg1[%c0, %c0_0] : memref<32x64xbf16, #tpu.memory_space<vmem>>, vector<32x64xbf16>
    %c0_1 = arith.constant 0 : index
    %c0_2 = arith.constant 0 : index
    %1 = vector.load %arg4[%c0_1, %c0_2] : memref<64x32xbf16, #tpu.memory_space<vmem>>, vector<64x32xbf16>
    %cst = arith.constant dense<0.000000e+00> : vector<32x32xf32>
    %2 = tpu.matmul %0, %1, %cst {dimension_numbers = #tpu.dot_dimension_numbers<[1], [0], [0], [1], [0, 0, 1, 1], [], []>} : vector<32x64xbf16>, vector<64x32xbf16>, vector<32x32xf32> -> vector<32x32xf32>
    %c0_3 = arith.constant 0 : index
    %c0_4 = arith.constant 0 : index
    %3 = vector.load %arg2[%c0_3, %c0_4] : memref<32x32xf32, #tpu.memory_space<vmem>>, vector<32x32xf32>
    %4 = arith.mulf %2, %3 : vector<32x32xf32>
    %c0_5 = arith.constant 0 : index
    %c0_6 = arith.constant 0 : index
    %5 = vector.load %arg3[%c0_5, %c0_6] : memref<32x32xf32, #tpu.memory_space<vmem>>, vector<32x32xf32>
    %6 = arith.addf %4, %5 : vector<32x32xf32>
    %7 = arith.truncf %6 : vector<32x32xf32> to vector<32x32xbf16>
    %c0_7 = arith.constant 0 : index
    %c0_8 = arith.constant 0 : index
    %8 = vector.load %arg5[%c0_7, %c0_8] : memref<32x128xbf16, #tpu.memory_space<vmem>>, vector<32x128xbf16>
    %cst_9 = arith.constant dense<0.000000e+00> : vector<32x128xf32>
    %9 = tpu.matmul %7, %8, %cst_9 {dimension_numbers = #tpu.dot_dimension_numbers<[1], [0], [0], [1], [0, 0, 1, 1], [], []>} : vector<32x32xbf16>, vector<32x128xbf16>, vector<32x128xf32> -> vector<32x128xf32>
    %c0_10 = arith.constant 0 : index
    %c0_11 = arith.constant 0 : index
    %10 = vector.load %arg6[%c0_10, %c0_11] : memref<1x128xf32, #tpu.memory_space<vmem>>, vector<1x128xf32>
    %11 = vector.broadcast %10 : vector<1x128xf32> to vector<32x128xf32>
    %12 = arith.addf %9, %11 : vector<32x128xf32>
    %c0_12 = arith.constant 0 : index
    %c0_13 = arith.constant 0 : index
    %13 = vector.load %arg7[%c0_12, %c0_13] : memref<32x128xf32, #tpu.memory_space<vmem>>, vector<32x128xf32>
    tpu.vector_store %arg7[%c0_12, %c0_13], %12 {strides = array<i32>} : memref<32x128xf32, #tpu.memory_space<vmem>>, vector<32x128xf32>,
    return
  }
  func.func @transform_0(%arg0: i32) -> (i32, i32) {
    %c0_i32 = arith.constant 0 : i32
    %c0_i32_0 = arith.constant 0 : i32
    return %arg0, %c0_i32 : i32, i32
  }
  func.func @transform_1(%arg0: i32) -> (i32, i32) {
    %c0_i32 = arith.constant 0 : i32
    %c0_i32_0 = arith.constant 0 : i32
    return %arg0, %c0_i32 : i32, i32
  }
  func.func @transform_2(%arg0: i32) -> (i32, i32) {
    %c0_i32 = arith.constant 0 : i32
    %c0_i32_0 = arith.constant 0 : i32
    return %arg0, %c0_i32 : i32, i32
  }
  func.func @transform_3(%arg0: i32) -> (i32, i32) {
    %c0_i32 = arith.constant 0 : i32
    %c0_i32_0 = arith.constant 0 : i32
    %c0_i32_1 = arith.constant 0 : i32
    return %c0_i32, %c0_i32_0 : i32, i32
  }
  func.func @transform_4(%arg0: i32) -> (i32, i32) {
    %c0_i32 = arith.constant 0 : i32
    %c0_i32_0 = arith.constant 0 : i32
    %c0_i32_1 = arith.constant 0 : i32
    return %c0_i32, %c0_i32_0 : i32, i32
  }
  func.func @transform_5(%arg0: i32) -> (i32, i32) {
    %c0_i32 = arith.constant 0 : i32
    %c0_i32_0 = arith.constant 0 : i32
    %c0_i32_1 = arith.constant 0 : i32
    return %c0_i32, %c0_i32_0 : i32, i32
  }
  func.func @transform_6(%arg0: i32) -> (i32, i32) {
    %c0_i32 = arith.constant 0 : i32
    %c0_i32_0 = arith.constant 0 : i32
    return %arg0, %c0_i32 : i32, i32
  }
}

</mosaic_0001>

<bundles_post_ra>
// kernel: tpu_custom_call.1
= control target key start
LH: loop header
LB: loop body
LE: loop exit
PB: predicated region body
PF: predicated region fallthrough
CT: control target
= control target key end

     0   :  { %11 = vsyncpa [#allocation3], 0  ;;  %s443_s0 = inlined_call_operand.vmem [shape: bf16[32,64], index: 0, kind: input, shape index: {}]   ;;  %s444_s1 = inlined_call_operand.vmem [shape: f32[32,32], index: 1, kind: input, shape index: {}]   ;;  %s445_s2 = inlined_call_operand.hbm [shape: f32[32,32], index: 2, kind: input, shape index: {}]   ;;  %s446_s3 = inlined_call_operand.vmem [shape: bf16[64,32], index: 3, kind: input, shape index: {}]   ;;  %s447_s4 = inlined_call_operand.hbm [shape: bf16[32,128], index: 4, kind: input, shape index: {}]   ;;  %s448_s5 = inlined_call_operand.vmem [shape: f32[1,128], index: 5, kind: input, shape index: {}]   ;;  %s449_s6 = inlined_call_operand.hbm [shape: f32[32,128], index: 6, kind: output, shape index: {}]  }
   0x1   :  { %12 = vsyncpa [#allocation6], 0 }
   0x2   :  { %13 = vsyncpa [#allocation4], 0  ;;  %s22_s23 = sshll.u32 %s445_s2, 4  ;;  %s353_s24 = smov [#allocation2]   ;;  %s23_s23 = int_to_ptr.hbm [resolvable:$true] %s22_s23 }
   0x3   :  { %s24_s25 = sshll.u32 %s353_s24, 4  ;;  %s37_s28 = sshll.u32 %s447_s4, 4  ;;  %s25_s25 = int_to_ptr.vmem [resolvable:$true] %s24_s25  ;;  %s38_s28 = int_to_ptr.hbm [resolvable:$true] %s37_s28 }
   0x4   :  { %s354_s29 = smov 128   ;;  %s355_s30 = smov 8  }
   0x5   :  { %30 = dma.hbm_to_vmem [thread:$0]  %s23_s23, 512, %s25_s25, [#allocation3], %s354_s29, %s354_s29, %s355_s30  }
   0x6   :  { %s356_s7 = smov [#allocation5]   ;;  %s357_s9 = smov 64  }
   0x7   :  { %s39_s8 = sshll.u32 %s356_s7, 4  ;;  %s358_s2 = smov 4   ;;  %s40_s8 = int_to_ptr.vmem [resolvable:$true] %s39_s8 }
   0x8   :  { %45 = dma.hbm_to_vmem [thread:$0]  %s38_s28, 256, %s40_s8, [#allocation6], %s357_s9, %s357_s9, %s358_s2  }
   0x9   :  { %347 = dma.done.wait [#allocation3], 512  }
   0xa   :  { %348 = vsyncadd [#allocation3], 4294966784 }
   0xb   :  { %349 = dma.done.wait [#allocation6], 256  }
   0xc   :  { %350 = vsyncadd [#allocation6], 4294967040  ;;  %v258_v0 = vld [vmem:[%s446_s3 + $0x18] sm:$0xff]  ;;  %v257_v1 = vld [vmem:[%s446_s3 + $0x10] sm:$0xff]  ;;  %vm103_vm0 = vcmask 523264   ;;  %vm167_vm1 = vcmask 261120  }
   0xd   :  { %114 = vmatpush.bf16.msra.mxu0 %v258_v0  ;;  %261 = vmatpush.bf16.msra.mxu2 %v258_v0  ;;  %v256_v2 = vld [vmem:[%s446_s3 + $0x8] sm:$0xff]  ;;  %v255_v3 = vld [vmem:[%s446_s3] sm:$0xff]  ;;  %v131_v18 = vld [vmem:[%s444_s1 + $0x10] sm:$0xff]  ;;  %s203_s2 = sshll.u32 %s449_s6, 4  ;;  %s204_s2 = int_to_ptr.hbm [resolvable:$true] %s203_s2 }
   0xe   :  { %v253_v4 = vld [vmem:[%s443_s0] sm:$0xff]  ;;  %v254_v5 = vld [vmem:[%s443_s0 + $0x8] sm:$0xff]  ;;  %v132_v20 = vld [vmem:[%s444_s1 + $0x18] sm:$0xff] }
   0xf   :  { %v260_v6 = vld [vmem:[#allocation5 + $0x8] sm:$0xff]  ;;  %v259_v7 = vld [vmem:[#allocation5] sm:$0xff]  ;;  %v139_v23 = vld [vmem:[#allocation2 + $0x10] sm:$0xff] }
  0x10   :  { %180 = vmatpush.bf16.msra.mxu1 %v260_v6  ;;  %265 = vmatpush.bf16.msra.mxu3 %v260_v6  ;;  %v129_v9 = vld [vmem:[%s444_s1] sm:$0xff]  ;;  %v130_v13 = vld [vmem:[%s444_s1 + $0x8] sm:$0xff]  ;;  %v140_v25 = vld [vmem:[#allocation2 + $0x18] sm:$0xff]  ;;  %s359_s1 = smov [#allocation7]  }
  0x11   :  { %115 = vmatpush.bf16.msra.mxu0 %v257_v1  ;;  %262 = vmatpush.bf16.msra.mxu2 %v257_v1  ;;  %v137_v11 = vld [vmem:[#allocation2] sm:$0xff]  ;;  %v138_v15 = vld [vmem:[#allocation2 + $0x8] sm:$0xff]  ;;  %s201_s7 = sshll.u32 %s359_s1, 4  ;;  %s202_s7 = int_to_ptr.vmem [resolvable:$true] %s201_s7 }
  0x12   :  { %v274_v30 = vld [vmem:[%s448_s5] ss:$0 sm:$0xff] }
  0x14   :  { %181 = vmatpush.bf16.msra.mxu1 %v259_v7  ;;  %266 = vmatpush.bf16.msra.mxu3 %v259_v7 }
  0x15   :  { %116 = vmatpush.bf16.msra.mxu0 %v256_v2  ;;  %263 = vmatpush.bf16.msra.mxu2 %v256_v2 }
  0x19   :  { %117 = vmatpush.bf16.msra.mxu0 %v255_v3  ;;  %264 = vmatpush.bf16.msra.mxu2 %v255_v3 }
  0x1c   :  { %241 = vmatmul.msk.bf16.vlgmr.msra.gmra.mxu0 %vm103_vm0, %v253_v4  ;;  %242 = vmatmul.msk.bf16.vlgmr.msra.gmra.mxu2 %vm103_vm0, %v254_v5 }
  0x99   :  { %v119_v8 = vpop.f32.mrf.mxu0 }
  0x9a   :  { %v133_v10 = vmul.f32 %v129_v9, %v119_v8 }
  0x9c   :  { %v141_v16 = vadd.f32 %v137_v11, %v133_v10 }
  0x9f   :  { %v124_v12 = vpop.f32.mrf.mxu2 }
  0xa0   :  { %v135_v21 = vmul.f32 %v131_v18, %v124_v12 }
  0xa1   :  { %v121_v14 = vpop.f32.mrf.mxu0 }
  0xa2   :  { %v134_v17 = vmul.f32 %v130_v13, %v121_v14  ;;  %v143_v27 = vadd.f32 %v139_v23, %v135_v21 }
  0xa4   :  { %v142_v19 = vadd.f32 %v138_v15, %v134_v17 }
  0xa6   :  { %v145_v22 = vpack.c.bf16 %v142_v19, %v141_v16 }
  0xa7   :  { %v126_v24 = vpop.f32.mrf.mxu2 }
  0xa8   :  { %v136_v26 = vmul.f32 %v132_v20, %v126_v24  ;;  %251 = vmatmul.msk.bf16.vlgmr.msra.gmra.mxu1 %vm167_vm1, %v145_v22 }
  0xaa   :  { %v144_v28 = vadd.f32 %v140_v25, %v136_v26 }
  0xac   :  { %v146_v29 = vpack.c.bf16 %v144_v28, %v143_v27 }
  0xae   :  { %252 = vmatmul.msk.bf16.vlgmr.msra.gmra.mxu3 %vm167_vm1, %v146_v29 }
 0x125   :  { %v183_v31 = vpop.f32.mrf.mxu1 }
 0x126   :  { %v184_v32 = vadd.f32 %v274_v30, %v183_v31 }
 0x128   :  { %193 = vst [vmem:[#allocation7] sm:$0xff] %v184_v32 }
 0x12d   :  { %v185_v33 = vpop.f32.mrf.mxu1 }
 0x12e   :  { %v186_v34 = vadd.f32 %v274_v30, %v185_v33 }
 0x130   :  { %194 = vst [vmem:[#allocation7 + $0x8] sm:$0xff] %v186_v34 }
 0x131   :  { %v188_v35 = vpop.f32.mrf.mxu3 }
 0x132   :  { %v189_v36 = vadd.f32 %v274_v30, %v188_v35 }
 0x134   :  { %195 = vst [vmem:[#allocation7 + $0x10] sm:$0xff] %v189_v36 }
 0x139   :  { %v190_v37 = vpop.f32.mrf.mxu3 }
 0x13a   :  { %v191_v38 = vadd.f32 %v274_v30, %v190_v37 }
 0x13c   :  { %196 = vst [vmem:[#allocation7 + $0x18] sm:$0xff] %v191_v38 }
 0x13d   :  { %209 = dma.vmem_to_hbm [thread:$0]  %s202_s7, 512, %s204_s2, [#allocation4], %s354_s29, %s354_s29, %s355_s30  }
 0x13e   :  { %351 = dma.done.wait [#allocation4], 512  }
 0x13f   :  { %352 = vsyncadd [#allocation4], 4294966784 }
 0x140   :  { %214 = vsyncpa [#allocation3], 1 }
 0x141   :  { %215 = vsyncpa [#allocation6], 1 }
 0x142   :  { %216 = vsyncpa [#allocation4], 1 }

</bundles_post_ra>
